<compile_context>
chip_gen: v5e
topology: v5e:2x2
jax: 0.10.0
libtpu: 0.0.40
codegen_flags: <defaults>
</compile_context>

<pallas_src>
import functools

import jax
import jax.numpy as jnp
from jax.experimental import pallas as pl
from jax.experimental.pallas import tpu as pltpu

EPS = 1e-8          # matches Metrics.eps
LANES = 128


def _round_up(x, m):
    return ((x + m - 1) // m) * m


def _pick_row_block(chunk, cap=512):
    """Largest multiple-of-8 divisor of `chunk` <= cap; fallback: whole chunk."""
    cands = [d for d in range(8, min(chunk, cap) + 1, 8) if chunk % d == 0]
    return max(cands) if cands else chunk


# ----------------------------------------------------------------------------
# Inception-Score kernel (Metrics._calc_is) — rows streamed within each chunk
# ----------------------------------------------------------------------------
def _is_kernel(acts_ref, out_ref, p_ref, ent_ref, *, chunk_rows):
    """acts_ref: (rblk, C) logits block for (chunk ci, row-block ri)
       out_ref : (1, 1, LANES) f32; chunk's IS broadcast across lanes
       p_ref   : (1, C) VMEM accumulator for sum_rows softmax(p)
       ent_ref : (1, LANES) VMEM accumulator for sum_rows entropy (broadcast)."""
    ri = pl.program_id(1)

    @pl.when(ri == 0)
    def _():
        p_ref[...] = jnp.zeros_like(p_ref)
        ent_ref[...] = jnp.zeros_like(ent_ref)

    a = acts_ref[...].astype(jnp.float32)
    m = jnp.max(a, axis=-1, keepdims=True)
    am = a - m
    e = jnp.exp(am)
    sum_e = jnp.sum(e, axis=-1, keepdims=True)
    # Exact per-row reciprocal: only (rblk, 1) values, negligible vs. the exp,
    # and keeps the score well inside 1e-3 of the reference (approx EUP rcp
    # error gets amplified by log(sum_e) in the entropy).
    inv = 1.0 / sum_e
    p = e * inv                                             # softmax posteriors
    # Row entropy: sum_c p*logp with logp = am - log(sum_e)
    #   = inv * sum_c(e*am) - log(sum_e).
    # Guard e==0 (underflow or -inf-padded lanes) so 0*(-inf) never appears.
    am_safe = jnp.where(e > 0.0, am, 0.0)
    s_eam = jnp.sum(e * am_safe, axis=-1, keepdims=True)    # (rblk, 1)
    ent_rows = inv * s_eam - jnp.log(sum_e)                 # (rblk, 1)

    p_ref[...] += jnp.sum(p, axis=0, keepdims=True)         # (1, C)
    ent_ref[...] += jnp.sum(ent_rows)                       # scalar broadcast

    @pl.when(ri == pl.num_programs(1) - 1)
    def _():
        inv_n = 1.0 / float(chunk_rows)
        prob_y = p_ref[...] * inv_n                          # (1, C)
        # mean_i(cross_i) == sum_c prob_y * log(prob_y + eps)  (exact identity)
        log_diversity = -jnp.sum(prob_y * jnp.log(prob_y + EPS))
        log_sharpness = ent_ref[...] * inv_n                 # (1, LANES)
        out_ref[...] = jnp.exp(log_sharpness + log_diversity).reshape(1, 1, LANES)


# ----------------------------------------------------------------------------
# FID streaming kernel — per-split partial sums (sum x, sum x^2) only
# ----------------------------------------------------------------------------
def _fid_partial_kernel(acts_ref, out_ref, sum_ref, sq_ref):
    """acts_ref: (blk, D) pooled-activation block (zero-padded tail rows OK)
       out_ref : (1, 2, D) f32; row 0 = sum x, row 1 = sum x^2 for this split
       sum_ref/sq_ref: (1, D) f32 VMEM accumulators."""
    i = pl.program_id(1)

    @pl.when(i == 0)
    def _():
        sum_ref[...] = jnp.zeros_like(sum_ref)
        sq_ref[...] = jnp.zeros_like(sq_ref)

    x = acts_ref[...].astype(jnp.float32)
    sum_ref[...] += jnp.sum(x, axis=0, keepdims=True)
    sq_ref[...] += jnp.sum(x * x, axis=0, keepdims=True)

    @pl.when(i == pl.num_programs(1) - 1)
    def _():
        out_ref[...] = jnp.concatenate(
            [sum_ref[...], sq_ref[...]], axis=0).reshape(out_ref.shape)


# ----------------------------------------------------------------------------
# Wrapper == Metrics.forward()
# ----------------------------------------------------------------------------
def metrics_forward(is_acts, fid_acts, mean_gt, sigma_gt):
    n_is, c = is_acts.shape
    n_fid, d = fid_acts.shape

    # ---------------- Inception Score (torch.split chunking) ----------------
    chunk = n_fid // 10
    assert chunk >= 1 and n_is % chunk == 0, \
        "is_acts must split evenly into chunks of n_fid // 10"
    n_chunks = n_is // chunk
    assert chunk % 8 == 0 or n_chunks == 1, "chunk rows must be sublane(8)-aligned"
    rblk = _pick_row_block(chunk)
    n_rb = chunk // rblk

    is_out = pl.pallas_call(
        functools.partial(_is_kernel, chunk_rows=chunk),
        out_shape=jax.ShapeDtypeStruct((n_chunks, 1, LANES), jnp.float32),
        grid_spec=pltpu.PrefetchScalarGridSpec(
            num_scalar_prefetch=0,
            grid=(n_chunks, n_rb),
            in_specs=[pl.BlockSpec((rblk, c),
                                   lambda ci, ri: (ci * n_rb + ri, 0))],
            out_specs=pl.BlockSpec((1, 1, LANES), lambda ci, ri: (ci, 0, 0)),
            scratch_shapes=[pltpu.VMEM((1, c), jnp.float32),       # sum_rows p
                            pltpu.VMEM((1, LANES), jnp.float32)],  # sum entropy
        ),
        compiler_params=pltpu.CompilerParams(
            dimension_semantics=("parallel", "arbitrary"),
            vmem_limit_bytes=32 * 1024 * 1024),
    )(is_acts)
    scores = is_out[:, 0, 0]                      # (n_chunks,)
    is_mean = jnp.mean(scores)
    if n_chunks > 1:
        is_std = jnp.std(scores, ddof=1)          # torch.std default (unbiased)
    else:
        is_std = jnp.zeros((), jnp.float32)       # torch would give NaN here

    # ------------------------------- FID ------------------------------------
    blk = min(1024, _round_up(n_fid, 8))
    nb_total = -(-n_fid // blk)
    n_split = 2 if nb_total >= 2 else 1           # 2 TCs on v7x; harmless on 1-TC
    nb_per = -(-nb_total // n_split)
    padded_rows = n_split * nb_per * blk
    fid_padded = fid_acts
    if padded_rows != n_fid:                      # zero rows contribute 0 to sums
        fid_padded = jnp.pad(fid_acts, ((0, padded_rows - n_fid), (0, 0)))

    partials = pl.pallas_call(
        _fid_partial_kernel,
        out_shape=jax.ShapeDtypeStruct((n_split, 2, d), jnp.float32),
        grid_spec=pltpu.PrefetchScalarGridSpec(
            num_scalar_prefetch=0,
            grid=(n_split, nb_per),
            in_specs=[pl.BlockSpec((blk, d),
                                   lambda s, i: (s * nb_per + i, 0))],
            out_specs=pl.BlockSpec((1, 2, d), lambda s, i: (s, 0, 0)),
            scratch_shapes=[pltpu.VMEM((1, d), jnp.float32),   # sum x
                            pltpu.VMEM((1, d), jnp.float32)],  # sum x^2
        ),
        compiler_params=pltpu.CompilerParams(
            dimension_semantics=("parallel", "arbitrary"),
            vmem_limit_bytes=32 * 1024 * 1024),
    )(fid_padded)

    # Tiny D-length finalize (mean / diag-cov / trace) in plain JAX.
    n = float(n_fid)
    sum_x = jnp.sum(partials[:, 0, :], axis=0)
    sum_xx = jnp.sum(partials[:, 1, :], axis=0)
    mean_x0 = sum_x * (1.0 / n)
    # diag(torch.cov(act.t())) == (sum x^2 - N*mean^2) / (N - 1)
    diag_x0 = jnp.maximum((sum_xx - n * mean_x0 * mean_x0) * (1.0 / (n - 1.0)), 0.0)
    diag_gt = jnp.diagonal(sigma_gt).astype(jnp.float32)
    mean_term = jnp.sum(jnp.square(mean_gt.astype(jnp.float32) - mean_x0))
    # trace(sg + sx0 - 2*sqrt(sg*sx0)) — only the diagonals contribute.
    trace_term = jnp.sum(diag_gt + diag_x0
                         - 2.0 * jnp.sqrt(jnp.maximum(diag_gt * diag_x0, 0.0)))
    fid_score = mean_term + trace_term

    return (is_mean, is_std), fid_score


# ----------------------------------------------------------------------------
# Pure-JAX reference (literal transcription of the torch code) for verification
# ----------------------------------------------------------------------------
def _reference_forward(is_acts, fid_acts, mean_gt, sigma_gt):
    chunk = fid_acts.shape[0] // 10
    scores = []
    for i in range(is_acts.shape[0] // chunk):
        a = is_acts[i * chunk:(i + 1) * chunk]
        p = jax.nn.softmax(a, axis=-1)
        prob_y = jnp.mean(p, axis=0)
        entropy = jnp.sum(p * jnp.log(p + EPS), axis=1)
        cross = jnp.sum(p * jnp.log(prob_y + EPS), axis=1)
        scores.append(jnp.exp(jnp.mean(entropy) - jnp.mean(cross)))
    scores = jnp.stack(scores)
    is_mean, is_std = jnp.mean(scores), jnp.std(scores, ddof=1)

    mean_x0 = jnp.mean(fid_acts, axis=0)
    cen = fid_acts - mean_x0
    sigma_x0 = cen.T @ cen / (fid_acts.shape[0] - 1)
    fid = (jnp.sum(jnp.square(mean_gt - mean_x0))
           + jnp.trace(sigma_gt + sigma_x0 - 2.0 * jnp.sqrt(sigma_gt * sigma_x0)))
    return is_mean, is_std, fid


if __name__ == "__main__":
    # Small, self-consistent shapes: 80 samples, 128 "classes" (fc) and 128
    # pooled features (avgpool stand-ins for 1000 / 2048).
    N, C_IS, D_FID = 80, 128, 128
    key = jax.random.PRNGKey(0)
    k1, k2, k3 = jax.random.split(key, 3)

    is_acts = 2.0 * jax.random.normal(k1, (N, C_IS), jnp.float32)              # fc logits
    fid_acts = jax.nn.relu(jax.random.normal(k2, (N, D_FID), jnp.float32))     # avgpool acts
    gt_acts = jax.nn.relu(jax.random.normal(k3, (N, D_FID), jnp.float32) + 0.1)

    # Metrics.setup(): ground-truth statistics (plain-JAX glue == _calc_fid_stats)
    mean_gt = jnp.mean(gt_acts, axis=0)
    gt_c = gt_acts - mean_gt
    sigma_gt = gt_c.T @ gt_c / (N - 1)

    (is_mean, is_std), fid = jax.jit(metrics_forward)(is_acts, fid_acts, mean_gt, sigma_gt)
    jax.block_until_ready((is_mean, is_std, fid))

    r_mean, r_std, r_fid = _reference_forward(is_acts, fid_acts, mean_gt, sigma_gt)
    assert jnp.allclose(is_mean, r_mean, rtol=1e-3, atol=1e-3), (is_mean, r_mean)
    assert jnp.allclose(is_std, r_std, rtol=1e-3, atol=1e-3), (is_std, r_std)
    assert jnp.allclose(fid, r_fid, rtol=1e-3, atol=1e-3), (fid, r_fid)

    print("KERNEL_OK")
</pallas_src>

<mosaic_0001>
module attributes {stable_mosaic.version = 11 : i64} {
  func.func @_is_kernel(%arg0: i32, %arg1: i32, %arg2: memref<8x128xf32, #tpu.memory_space<vmem>>, %arg3: memref<1x1x128xf32, #tpu.memory_space<vmem>>, %arg4: memref<1x128xf32, #tpu.memory_space<vmem>>, %arg5: memref<1x128xf32, #tpu.memory_space<vmem>>) attributes {dimension_semantics = [#tpu.dimension_semantics<parallel>, #tpu.dimension_semantics<arbitrary>], iteration_bounds = array<i64: 10, 1>, scalar_prefetch = 0 : i64, scratch_operands = 2 : i64, tpu.core_type = #tpu.core_type<tc>, window_params = [{transform_indices = @transform_0, window_bounds = array<i64: 8, 128>}, {transform_indices = @transform_1, window_bounds = array<i64: 1, 1, 128>}]} {
    %c0_i32 = arith.constant 0 : i32
    %0 = arith.cmpi eq, %arg1, %c0_i32 : i32
    %1 = arith.extui %0 : i1 to i32
    %c0_i32_0 = arith.constant 0 : i32
    %2 = arith.cmpi ne, %1, %c0_i32_0 : i32
    scf.if %2 {
      %cst_19 = arith.constant 0.000000e+00 : f32
      %41 = vector.broadcast %cst_19 : f32 to vector<1x128xf32>
      %c0_20 = arith.constant 0 : index
      %c0_21 = arith.constant 0 : index
      %42 = vector.load %arg4[%c0_20, %c0_21] : memref<1x128xf32, #tpu.memory_space<vmem>>, vector<1x128xf32>
      tpu.vector_store %arg4[%c0_20, %c0_21], %41 {strides = array<i32>} : memref<1x128xf32, #tpu.memory_space<vmem>>, vector<1x128xf32>,
      %cst_22 = arith.constant 0.000000e+00 : f32
      %43 = vector.broadcast %cst_22 : f32 to vector<1x128xf32>
      %c0_23 = arith.constant 0 : index
      %c0_24 = arith.constant 0 : index
      %44 = vector.load %arg5[%c0_23, %c0_24] : memref<1x128xf32, #tpu.memory_space<vmem>>, vector<1x128xf32>
      tpu.vector_store %arg5[%c0_23, %c0_24], %43 {strides = array<i32>} : memref<1x128xf32, #tpu.memory_space<vmem>>, vector<1x128xf32>,
    } else {
    }
    %c0 = arith.constant 0 : index
    %c0_1 = arith.constant 0 : index
    %3 = vector.load %arg2[%c0, %c0_1] : memref<8x128xf32, #tpu.memory_space<vmem>>, vector<8x128xf32>
    %cst = arith.constant dense<0xFF800000> : vector<8xf32>
    %4 = vector.multi_reduction <maximumf>, %3, %cst [1] : vector<8x128xf32> to vector<8xf32>
    %5 = vector.shape_cast %4 : vector<8xf32> to vector<8x1xf32>
    %6 = vector.broadcast %5 : vector<8x1xf32> to vector<8x128xf32>
    %7 = arith.subf %3, %6 : vector<8x128xf32>
    %8 = math.exp %7 : vector<8x128xf32>
    %cst_2 = arith.constant dense<0.000000e+00> : vector<8xf32>
    %9 = vector.multi_reduction <add>, %8, %cst_2 [1] : vector<8x128xf32> to vector<8xf32>
    %10 = vector.shape_cast %9 : vector<8xf32> to vector<8x1xf32>
    %cst_3 = arith.constant 1.000000e+00 : f32
    %11 = vector.broadcast %cst_3 : f32 to vector<8x1xf32>
    %12 = arith.divf %11, %10 : vector<8x1xf32>
    %13 = vector.broadcast %12 : vector<8x1xf32> to vector<8x128xf32>
    %14 = arith.mulf %8, %13 : vector<8x128xf32>
    %cst_4 = arith.constant 0.000000e+00 : f32
    %15 = vector.broadcast %cst_4 : f32 to vector<8x128xf32>
    %16 = arith.cmpf ogt, %8, %15 : vector<8x128xf32>
    %cst_5 = arith.constant 0.000000e+00 : f32
    %17 = vector.broadcast %cst_5 : f32 to vector<8x128xf32>
    %18 = arith.select %16, %7, %17 : vector<8x128xi1>, vector<8x128xf32>
    %19 = arith.mulf %8, %18 : vector<8x128xf32>
    %cst_6 = arith.constant dense<0.000000e+00> : vector<8xf32>
    %20 = vector.multi_reduction <add>, %19, %cst_6 [1] : vector<8x128xf32> to vector<8xf32>
    %21 = vector.shape_cast %20 : vector<8xf32> to vector<8x1xf32>
    %22 = arith.mulf %12, %21 : vector<8x1xf32>
    %23 = math.log %10 : vector<8x1xf32>
    %24 = arith.subf %22, %23 : vector<8x1xf32>
    %c0_7 = arith.constant 0 : index
    %c0_8 = arith.constant 0 : index
    %25 = vector.load %arg4[%c0_7, %c0_8] : memref<1x128xf32, #tpu.memory_space<vmem>>, vector<1x128xf32>
    %cst_9 = arith.constant dense<0.000000e+00> : vector<128xf32>
    %26 = vector.multi_reduction <add>, %14, %cst_9 [0] : vector<8x128xf32> to vector<128xf32>
    %27 = vector.shape_cast %26 : vector<128xf32> to vector<1x128xf32>
    %28 = arith.addf %25, %27 : vector<1x128xf32>
    %c0_10 = arith.constant 0 : index
    %c0_11 = arith.constant 0 : index
    %29 = vector.load %arg4[%c0_10, %c0_11] : memref<1x128xf32, #tpu.memory_space<vmem>>, vector<1x128xf32>
    tpu.vector_store %arg4[%c0_10, %c0_11], %28 {strides = array<i32>} : memref<1x128xf32, #tpu.memory_space<vmem>>, vector<1x128xf32>,
    %c0_12 = arith.constant 0 : index
    %c0_13 = arith.constant 0 : index
    %30 = vector.load %arg5[%c0_12, %c0_13] : memref<1x128xf32, #tpu.memory_space<vmem>>, vector<1x128xf32>
    %31 = vector.shape_cast %24 : vector<8x1xf32> to vector<1x8x1xf32>
    %cst_14 = arith.constant dense<0.000000e+00> : vector<1xf32>
    %32 = vector.multi_reduction <add>, %31, %cst_14 [1, 2] : vector<1x8x1xf32> to vector<1xf32>
    %33 = vector.shape_cast %32 : vector<1xf32> to vector<1x1x1xf32>
    %34 = vector.extract %33[0, 0, 0] : f32 from vector<1x1x1xf32>
    %35 = vector.broadcast %34 : f32 to vector<1x128xf32>
    %36 = arith.addf %30, %35 : vector<1x128xf32>
    %c0_15 = arith.constant 0 : index
    %c0_16 = arith.constant 0 : index
    %37 = vector.load %arg5[%c0_15, %c0_16] : memref<1x128xf32, #tpu.memory_space<vmem>>, vector<1x128xf32>
    tpu.vector_store %arg5[%c0_15, %c0_16], %36 {strides = array<i32>} : memref<1x128xf32, #tpu.memory_space<vmem>>, vector<1x128xf32>,
    %c0_i32_17 = arith.constant 0 : i32
    %38 = arith.cmpi eq, %arg1, %c0_i32_17 : i32
    %39 = arith.extui %38 : i1 to i32
    %c0_i32_18 = arith.constant 0 : i32
    %40 = arith.cmpi ne, %39, %c0_i32_18 : i32
    scf.if %40 {
      %c0_19 = arith.constant 0 : index
      %c0_20 = arith.constant 0 : index
      %41 = vector.load %arg4[%c0_19, %c0_20] : memref<1x128xf32, #tpu.memory_space<vmem>>, vector<1x128xf32>
      %cst_21 = arith.constant 1.250000e-01 : f32
      %42 = vector.broadcast %cst_21 : f32 to vector<1x128xf32>
      %43 = arith.mulf %41, %42 : vector<1x128xf32>
      %cst_22 = arith.constant 9.99999993E-9 : f32
      %44 = vector.broadcast %cst_22 : f32 to vector<1x128xf32>
      %45 = arith.addf %43, %44 : vector<1x128xf32>
      %46 = math.log %45 : vector<1x128xf32>
      %47 = arith.mulf %43, %46 : vector<1x128xf32>
      %48 = vector.shape_cast %47 : vector<1x128xf32> to vector<1x1x128xf32>
      %cst_23 = arith.constant dense<0.000000e+00> : vector<1xf32>
      %49 = vector.multi_reduction <add>, %48, %cst_23 [1, 2] : vector<1x1x128xf32> to vector<1xf32>
      %50 = vector.shape_cast %49 : vector<1xf32> to vector<1x1x1xf32>
      %51 = vector.extract %50[0, 0, 0] : f32 from vector<1x1x1xf32>
      %cst_24 = arith.constant 0.000000e+00 : f32
      %52 = arith.subf %cst_24, %51 : f32
      %c0_25 = arith.constant 0 : index
      %c0_26 = arith.constant 0 : index
      %53 = vector.load %arg5[%c0_25, %c0_26] : memref<1x128xf32, #tpu.memory_space<vmem>>, vector<1x128xf32>
      %cst_27 = arith.constant 1.250000e-01 : f32
      %54 = vector.broadcast %cst_27 : f32 to vector<1x128xf32>
      %55 = arith.mulf %53, %54 : vector<1x128xf32>
      %56 = vector.broadcast %52 : f32 to vector<1x128xf32>
      %57 = arith.addf %55, %56 : vector<1x128xf32>
      %58 = math.exp %57 : vector<1x128xf32>
      %59 = vector.shape_cast %58 : vector<1x128xf32> to vector<1x1x128xf32>
      %c0_28 = arith.constant 0 : index
      %c0_29 = arith.constant 0 : index
      %c0_30 = arith.constant 0 : index
      %60 = vector.load %arg3[%c0_28, %c0_29, %c0_30] : memref<1x1x128xf32, #tpu.memory_space<vmem>>, vector<1x1x128xf32>
      tpu.vector_store %arg3[%c0_28, %c0_29, %c0_30], %59 {strides = array<i32>} : memref<1x1x128xf32, #tpu.memory_space<vmem>>, vector<1x1x128xf32>,
    } else {
    }
    return
  }
  func.func @transform_0(%arg0: i32, %arg1: i32) -> (i32, i32) {
    %c1_i32 = arith.constant 1 : i32
    %0 = arith.muli %arg0, %c1_i32 : i32
    %1 = arith.addi %0, %arg1 : i32
    %c0_i32 = arith.constant 0 : i32
    %c0_i32_0 = arith.constant 0 : i32
    return %1, %c0_i32 : i32, i32
  }
  func.func @transform_1(%arg0: i32, %arg1: i32) -> (i32, i32, i32) {
    %c0_i32 = arith.constant 0 : i32
    %c0_i32_0 = arith.constant 0 : i32
    %c0_i32_1 = arith.constant 0 : i32
    return %arg0, %c0_i32, %c0_i32_0 : i32, i32, i32
  }
}

module attributes {stable_mosaic.version = 11 : i64} {
  func.func @_fid_partial_kernel(%arg0: i32, %arg1: i32, %arg2: memref<80x128xf32, #tpu.memory_space<vmem>>, %arg3: memref<1x2x128xf32, #tpu.memory_space<vmem>>, %arg4: memref<1x128xf32, #tpu.memory_space<vmem>>, %arg5: memref<1x128xf32, #tpu.memory_space<vmem>>) attributes {dimension_semantics = [#tpu.dimension_semantics<parallel>, #tpu.dimension_semantics<arbitrary>], iteration_bounds = array<i64: 1, 1>, scalar_prefetch = 0 : i64, scratch_operands = 2 : i64, tpu.core_type = #tpu.core_type<tc>, window_params = [{transform_indices = @transform_0, window_bounds = array<i64: 80, 128>}, {transform_indices = @transform_1, window_bounds = array<i64: 1, 2, 128>}]} {
    %c0_i32 = arith.constant 0 : i32
    %0 = arith.cmpi eq, %arg1, %c0_i32 : i32
    %1 = arith.extui %0 : i1 to i32
    %c0_i32_0 = arith.constant 0 : i32
    %2 = arith.cmpi ne, %1, %c0_i32_0 : i32
    scf.if %2 {
      %cst_13 = arith.constant 0.000000e+00 : f32
      %18 = vector.broadcast %cst_13 : f32 to vector<1x128xf32>
      %c0_14 = arith.constant 0 : index
      %c0_15 = arith.constant 0 : index
      %19 = vector.load %arg4[%c0_14, %c0_15] : memref<1x128xf32, #tpu.memory_space<vmem>>, vector<1x128xf32>
      tpu.vector_store %arg4[%c0_14, %c0_15], %18 {strides = array<i32>} : memref<1x128xf32, #tpu.memory_space<vmem>>, vector<1x128xf32>,
      %cst_16 = arith.constant 0.000000e+00 : f32
      %20 = vector.broadcast %cst_16 : f32 to vector<1x128xf32>
      %c0_17 = arith.constant 0 : index
      %c0_18 = arith.constant 0 : index
      %21 = vector.load %arg5[%c0_17, %c0_18] : memref<1x128xf32, #tpu.memory_space<vmem>>, vector<1x128xf32>
      tpu.vector_store %arg5[%c0_17, %c0_18], %20 {strides = array<i32>} : memref<1x128xf32, #tpu.memory_space<vmem>>, vector<1x128xf32>,
    } else {
    }
    %c0 = arith.constant 0 : index
    %c0_1 = arith.constant 0 : index
    %3 = vector.load %arg2[%c0, %c0_1] : memref<80x128xf32, #tpu.memory_space<vmem>>, vector<80x128xf32>
    %c0_2 = arith.constant 0 : index
    %c0_3 = arith.constant 0 : index
    %4 = vector.load %arg4[%c0_2, %c0_3] : memref<1x128xf32, #tpu.memory_space<vmem>>, vector<1x128xf32>
    %cst = arith.constant dense<0.000000e+00> : vector<128xf32>
    %5 = vector.multi_reduction <add>, %3, %cst [0] : vector<80x128xf32> to vector<128xf32>
    %6 = vector.shape_cast %5 : vector<128xf32> to vector<1x128xf32>
    %7 = arith.addf %4, %6 : vector<1x128xf32>
    %c0_4 = arith.constant 0 : index
    %c0_5 = arith.constant 0 : index
    %8 = vector.load %arg4[%c0_4, %c0_5] : memref<1x128xf32, #tpu.memory_space<vmem>>, vector<1x128xf32>
    tpu.vector_store %arg4[%c0_4, %c0_5], %7 {strides = array<i32>} : memref<1x128xf32, #tpu.memory_space<vmem>>, vector<1x128xf32>,
    %c0_6 = arith.constant 0 : index
    %c0_7 = arith.constant 0 : index
    %9 = vector.load %arg5[%c0_6, %c0_7] : memref<1x128xf32, #tpu.memory_space<vmem>>, vector<1x128xf32>
    %10 = arith.mulf %3, %3 : vector<80x128xf32>
    %cst_8 = arith.constant dense<0.000000e+00> : vector<128xf32>
    %11 = vector.multi_reduction <add>, %10, %cst_8 [0] : vector<80x128xf32> to vector<128xf32>
    %12 = vector.shape_cast %11 : vector<128xf32> to vector<1x128xf32>
    %13 = arith.addf %9, %12 : vector<1x128xf32>
    %c0_9 = arith.constant 0 : index
    %c0_10 = arith.constant 0 : index
    %14 = vector.load %arg5[%c0_9, %c0_10] : memref<1x128xf32, #tpu.memory_space<vmem>>, vector<1x128xf32>
    tpu.vector_store %arg5[%c0_9, %c0_10], %13 {strides = array<i32>} : memref<1x128xf32, #tpu.memory_space<vmem>>, vector<1x128xf32>,
    %c0_i32_11 = arith.constant 0 : i32
    %15 = arith.cmpi eq, %arg1, %c0_i32_11 : i32
    %16 = arith.extui %15 : i1 to i32
    %c0_i32_12 = arith.constant 0 : i32
    %17 = arith.cmpi ne, %16, %c0_i32_12 : i32
    scf.if %17 {
      %c0_13 = arith.constant 0 : index
      %c0_14 = arith.constant 0 : index
      %18 = vector.load %arg4[%c0_13, %c0_14] : memref<1x128xf32, #tpu.memory_space<vmem>>, vector<1x128xf32>
      %c0_15 = arith.constant 0 : index
      %c0_16 = arith.constant 0 : index
      %19 = vector.load %arg5[%c0_15, %c0_16] : memref<1x128xf32, #tpu.memory_space<vmem>>, vector<1x128xf32>
      %20 = tpu.concatenate %18, %19 in 0 : vector<1x128xf32>, vector<1x128xf32> -> vector<2x128xf32>
      %21 = vector.shape_cast %20 : vector<2x128xf32> to vector<1x2x128xf32>
      %c0_17 = arith.constant 0 : index
      %c0_18 = arith.constant 0 : index
      %c0_19 = arith.constant 0 : index
      %22 = vector.load %arg3[%c0_17, %c0_18, %c0_19] : memref<1x2x128xf32, #tpu.memory_space<vmem>>, vector<1x2x128xf32>
      tpu.vector_store %arg3[%c0_17, %c0_18, %c0_19], %21 {strides = array<i32>} : memref<1x2x128xf32, #tpu.memory_space<vmem>>, vector<1x2x128xf32>,
    } else {
    }
    return
  }
  func.func @transform_0(%arg0: i32, %arg1: i32) -> (i32, i32) {
    %c1_i32 = arith.constant 1 : i32
    %0 = arith.muli %arg0, %c1_i32 : i32
    %1 = arith.addi %0, %arg1 : i32
    %c0_i32 = arith.constant 0 : i32
    %c0_i32_0 = arith.constant 0 : i32
    return %1, %c0_i32 : i32, i32
  }
  func.func @transform_1(%arg0: i32, %arg1: i32) -> (i32, i32, i32) {
    %c0_i32 = arith.constant 0 : i32
    %c0_i32_0 = arith.constant 0 : i32
    %c0_i32_1 = arith.constant 0 : i32
    return %arg0, %c0_i32, %c0_i32_0 : i32, i32, i32
  }
}

</mosaic_0001>

<bundles_post_ra>
// kernel: metrics_forward.2
= control target key start
LH: loop header
LB: loop body
LE: loop exit
PB: predicated region body
PF: predicated region fallthrough
CT: control target
= control target key end

     0   :  { %6 = vsyncpa [#allocation5], 0  ;;  %s568_s0 = inlined_call_operand.hbm [shape: f32[80,128], index: 0, kind: input, shape index: {}]   ;;  %s569_s1 = inlined_call_operand.vmem [shape: f32[10,1,128], index: 1, kind: output, shape index: {}]  }
   0x1   :  { %8 = vsyncpa [#allocation5 + $0x1], 0  ;;  %s480_s6 = smov 0   ;;  %s482_s7 = smov 0  }
   0x2   :  { %s484_s8 = smov 0   ;;  %s486_s9 = smov 0  }
   0x3   :  { %s488_s10 = smov 0   ;;  %s490_s11 = smov 0  }
   0x4 LB: > { %s307_s12 = sadd.s32 4294967295, %s467_s11   ;;  %s26_s13 = sadd.s32 1, %s463_s10  ;;  %s467_s11 = sphi %s490_s11, %s14_s11   ;;  %s463_s10 = sphi %s488_s10, %s576_s10   ;;  %s459_s9 = sphi %s486_s9, %s575_s9   ;;  %s455_s8 = sphi %s484_s8, %s574_s8   ;;  %s451_s7 = sphi %s482_s7, %s573_s7   ;;  %s447_s6 = sphi %s480_s6, %s572_s6  }
   0x5   : > { %p28_p0 = scmp.ge.s32.totalorder %s26_s13, 10  ;;  %s35_s14 = sadd.s32 1, %s455_s8 }
   0x6   : > { %p42_p1 = scmp.ne.s32.totalorder %s455_s8, %s451_s7  ;;  %p43_p2 = scmp.eq.s32.totalorder %s467_s11, 0 }
   0x7   : > { %s578_s13 = smov (%p28_p0, %s26_s13), 0  ;;  %p48_p4 = scmp.ne.s32.totalorder %s451_s7, %s447_s6 }
   0x8   : > { %p516_p3 = por %p43_p2, %p42_p1  ;;  %s32_s16 = ssub.s32 %s463_s10, %s578_s13 }
   0x9   : > { %p49_p5 = scmp.eq.s32.totalorder %s307_s12, 0  ;;  %p33_p6 = scmp.eq.s32.totalorder %s32_s16, 0 }
   0xa   : > { %p327_p8 = scmp.lt.s32.totalorder %s467_s11, 10  ;;  %s98_s19 = sand.u32 1, %s455_s8  }
   0xb   : > { %p523_p7 = por %p49_p5, %p48_p4  ;;  %s312_s20 = sshll.u32 %s463_s10, 3 }
   0xc   : > { %s529_s18 = scalar_select %p33_p6, %s455_s8, %s35_s14  }
   0xd   : > { %s311_s21 = sshll.u32 %s98_s19, 3  ;;  %s107_s24 = scalar_lea.hbm %s568_s0, %s312_s20 }
   0xe   : > { %s109_s25 = sshll.u32 %s107_s24, 4  ;;  %s102_s26 = scalar_lea.vmem [#allocation4], %s311_s21  ;;  %s110_s25 = int_to_ptr.hbm [resolvable:$true] %s109_s25 }
   0xf   : > { %s111_s27 = sshll.u32 %s102_s26, 4  ;;  %p324_p9 = pnand %p327_p8, %p516_p3  ;;  %s112_s27 = int_to_ptr.vmem [resolvable:$true] %s111_s27 }
  0x10   : > { %p313_p10 = scmp.ge.s32.totalorder %s467_s11, 1  ;;  %p116_p11 = scmp.lt.s32.totalorder %s467_s11, 11 }
  0x11   : > { %s99_s28 = scalar_lea.sflag [#allocation5], %s98_s19 }
  0x12   : > { %326 = dma.hbm_to_vmem [thread:$0]  (!%p324_p9), %s110_s25, 128, %s112_s27, %s99_s28  }
  0x13   : > { %p117_p12 = pnand %p313_p10, %p116_p11 }
  0x14   : > { %s122_s29 = sand.u32 (!%p117_p12), 1, %s451_s7  }
  0x15   : > { %120 = sbr.rel (%p117_p12) target bundleno = 521 (0x209), region = 24  ;;  %s314_s30 = sshll.u32 (!%p117_p12), %s122_s29, 3 }
  0x16   : > { %s123_s2 = scalar_lea.sflag (!%p117_p12), [#allocation5], %s122_s29  ;;  %s126_s3 = scalar_lea.vmem (!%p117_p12), [#allocation4], %s314_s30 }
  0x1a   : > { %442 = dma.done.wait (%p523_p7), %s123_s2, 128  }
  0x1b   : > { %444 = vsyncadd (%p523_p7), %s123_s2, 4294967168  ;;  %v154_v0 = vld [vmem:[%s126_s3] sm:$0xff]  ;;  %v469_v7 = vmov 0.0   ;;  %vm197_vm5 = vcmask 7168   ;;  %vm220_vm6 = vcmask 1040384   ;;  %p145_p13 = scmp.lt.s32.totalorder %s459_s9, 9 }
  0x1c   : > { %155 = vmax.xlane.f32.xlu0 %v154_v0  ;;  %152 = vst [vmem:[#allocation2] sm:$0x1] %v469_v7 }
  0x1d   : > { %153 = vst [vmem:[#allocation3] sm:$0x1] %v469_v7  ;;  %s580_s9 = smov (!%p145_p13, %s459_s9), 9 }
  0x1e   : > { %s147_s15 = scalar_lea.vmem %s569_s1, %s580_s9 }
  0x23   : > { %v187_v31 = vld [vmem:[#allocation2] sm:$0x1] }
  0x24   : > { %v196_v55 = vld [vmem:[#allocation3] sm:$0x1] }
  0x8f   : > { %v156_v1 = vpop.xlane.xlu0 %155 }
  0x90   : > { %v157_v2 = vsub.f32 %v154_v0, %v156_v1 }
  0x92   : > { %v158_v3 = vmul.f32 1.442695, %v157_v2 }
  0x94   : > { %377 = vpow2.f32 %v158_v3 }
  0x9a   : > { %v378_v4 = vpop.eup %377 }
  0x9b   : > { %160 = vadd.xlane.f32.xlu0 %v378_v4  ;;  %vm178_vm0 = vcmp.gt.f32.partialorder %v378_v4, 0.0 }
  0x9c   : > { %v179_v5 = vsel %vm178_vm0, %v157_v2, 0.0 }
  0x9d   : > { %v180_v6 = vmul.f32 %v378_v4, %v179_v5 }
  0x9f   : > { %181 = vadd.xlane.f32.xlu1 %v180_v6 }
 0x10e   : > { %v161_v8 = vpop.xlane.xlu0 %160 }
 0x10f   : > { %379 = vrcp.f32 %v161_v8  ;;  %v173_v12 = vand.u32 2147483648, %v161_v8  ;;  %v171_v14 = vand.u32 2147483647, %v161_v8  ;;  %vm167_vm2 = vweird.f32 %v161_v8 }
 0x110   : > { %381 = vlog2.f32 %v161_v8 }
 0x111   : > { %v174_v17 = vor.u32 1.1754944e-38, %v173_v12  ;;  %vm172_vm4 = vcmp.eq.f32.partialorder %v171_v14, 8.507059e+37 }
 0x112   : > { %v182_v20 = vpop.xlane.xlu1 %181 }
 0x115   : > { %v380_v9 = vpop.eup %379 }
 0x116   : > { %v163_v10 = vmul.f32 %v380_v9, %v161_v8  ;;  %vm168_vm1 = vweird.f32 %v380_v9  ;;  %v382_v16 = vpop.eup %381 }
 0x117   : > { %vm169_vm3 = vmor %vm167_vm2, %vm168_vm1  ;;  %v185_v23 = vmul.f32 0.6931472, %v382_v16 }
 0x118   : > { %v164_v11 = vsub.f32 1.0, %v163_v10 }
 0x11a   : > { %v165_v13 = vmul.f32 %v380_v9, %v164_v11 }
 0x11c   : > { %v166_v15 = vadd.f32 %v380_v9, %v165_v13 }
 0x11e   : > { %v170_v18 = vsel %vm169_vm3, %v380_v9, %v166_v15 }
 0x11f   : > { %v175_v19 = vsel %vm172_vm4, %v174_v17, %v170_v18 }
 0x120   : > { %v177_v21 = vmul.f32 %v378_v4, %v175_v19  ;;  %v183_v22 = vmul.f32 %v182_v20, %v175_v19 }
 0x122   : > { %v188_v24 = vrot.slane %v177_v21, 4  ;;  %v186_v25 = vsub.f32 %v183_v22, %v185_v23 }
 0x124   : > { %v189_v26 = vadd.f32 %v188_v24, %v177_v21  ;;  %v198_v27 = vsel %vm197_vm5, %v186_v25, 0.0 }
 0x125   : > { %199 = vadd.xlane.f32.xlu1 %v198_v27 }
 0x126   : > { %v190_v28 = vrot.slane %v189_v26, 2 }
 0x128   : > { %v191_v29 = vadd.f32 %v190_v28, %v189_v26 }
 0x12a   : > { %v192_v30 = vrot.slane %v191_v29, 1 }
 0x12c   : > { %v193_v32 = vadd.f32 %v192_v30, %v191_v29 }
 0x12e   : > { %v194_v33 = vadd.f32 %v193_v32, %v187_v31 }
 0x130   : > { %195 = vst [vmem:[#allocation2] sm:$0x1] %v194_v33 }
 0x137   : > { %v214_v34 = vld [vmem:[#allocation2] sm:$0x1] }
 0x138   : > { %v215_v35 = vmul.f32 0.125, %v214_v34 }
 0x13a   : > { %v216_v36 = vadd.f32 1e-08, %v215_v35 }
 0x13c   : > { %383 = vlog2.f32 %v216_v36 }
 0x142   : > { %v384_v37 = vpop.eup %383 }
 0x143   : > { %v218_v38 = vmul.f32 0.6931472, %v384_v37 }
 0x145   : > { %v219_v39 = vmul.f32 %v218_v38, %v215_v35 }
 0x147   : > { %v221_v40 = vsel %vm220_vm6, %v219_v39, 0.0 }
 0x148   : > { %222 = vadd.xlane.f32.xlu2 %v221_v40 }
 0x198   : > { %v200_v41 = vpop.xlane.xlu1 %199 }
 0x199   : > { %v201_v42 = vrot.slane %v200_v41, 4 }
 0x19b   : > { %v202_v43 = vadd.f32 %v201_v42, %v200_v41 }
 0x19d   : > { %v203_v44 = vrot.slane %v202_v43, 2 }
 0x19f   : > { %v204_v45 = vadd.f32 %v203_v44, %v202_v43 }
 0x1a1   : > { %v205_v46 = vrot.slane %v204_v45, 1 }
 0x1a3   : > { %v206_v47 = vadd.f32 %v205_v46, %v204_v45 }
 0x1a5   : > { %317 = vpush %v206_v47 }
 0x1bb   : > { %v223_v48 = vpop.xlane.xlu2 %222 }
 0x1bc   : > { %v224_v49 = vrot.slane %v223_v48, 4 }
 0x1be   : > { %v225_v50 = vadd.f32 %v224_v49, %v223_v48 }
 0x1c0   : > { %v226_v51 = vrot.slane %v225_v50, 2 }
 0x1c2   : > { %v227_v52 = vadd.f32 %v226_v51, %v225_v50 }
 0x1c4   : > { %v228_v53 = vrot.slane %v227_v52, 1 }
 0x1c6   : > { %v229_v54 = vadd.f32 %v228_v53, %v227_v52 }
 0x1c8   : > { %319 = vpush %v229_v54 }
 0x1d6   : > { %s318_s4 = spop %317 }
 0x1d7   : > { %v208_v56 = vstv %s318_s4 }
 0x1d8   : > { %v209_v57 = vadd.f32 %v208_v56, %v196_v55 }
 0x1da   : > { %210 = vst [vmem:[#allocation3] sm:$0x1] %v209_v57 }
 0x1e1   : > { %v232_v58 = vld [vmem:[#allocation3] sm:$0x1] }
 0x1e2   : > { %v233_v59 = vmul.f32 0.125, %v232_v58 }
 0x1f9   : > { %s320_s5 = spop %319 }
 0x1fa   : > { %s231_s6 = ssub.f32 0.0, %s320_s5 }
 0x1fc   : > { %v234_v60 = vstv %s231_s6 }
 0x1fd   : > { %v235_v61 = vadd.f32 %v234_v60, %v233_v59 }
 0x1ff   : > { %v236_v62 = vmul.f32 1.442695, %v235_v61 }
 0x201   : > { %385 = vpow2.f32 %v236_v62 }
 0x207   : > { %v386_v63 = vpop.eup %385 }
 0x208   : > { %238 = vst [vmem:[%s147_s15] sm:$0x1] %v386_v63 }
 0x209 PF: > { %s14_s11 = sadd.s32 1, %s467_s11   ;;  %s572_s6 = smov %s451_s7 }
 0x20a   : > { %p11_p0 = scmp.ge.s32.totalorder %s14_s11, 12   ;;  %s573_s7 = smov %s455_s8 }
 0x20b   : > { %s574_s8 = smov %s529_s18  ;;  %s575_s9 = smov %s463_s10 }
 0x20c   : > { %s576_s10 = smov %s578_s13  ;;  %13 = sbr.rel (!%p11_p0) target bundleno = 4 (0x4), region = 72 }
 0x211   :  { %256 = vsyncpa [#allocation5], 1 }
 0x212   :  { %258 = vsyncpa [#allocation5 + $0x1], 1 }

// kernel: metrics_forward.3
= control target key start
LH: loop header
LB: loop body
LE: loop exit
PB: predicated region body
PF: predicated region fallthrough
CT: control target
= control target key end

     0   :  { %v115_v0 = vmov 0.0   ;;  %vm100_vm0 = vcmask 1040384   ;;  %s159_s0 = inlined_call_operand.vmem [shape: f32[80,128], index: 0, kind: input, shape index: {}]   ;;  %s160_s1 = inlined_call_operand.vmem [shape: f32[1,2,128], index: 1, kind: output, shape index: {}]  }
   0x1   :  { %35 = vst [vmem:[#allocation3] sm:$0x1] %v115_v0  ;;  %v36_v1 = vld [vmem:[%s159_s0] sm:$0xff]  ;;  %v37_v2 = vld [vmem:[%s159_s0 + $0x8] sm:$0xff]  ;;  %v38_v3 = vld [vmem:[%s159_s0 + $0x10] sm:$0xff] }
   0x2   :  { %34 = vst [vmem:[#allocation2] sm:$0x1] %v115_v0  ;;  %v39_v4 = vld [vmem:[%s159_s0 + $0x18] sm:$0xff]  ;;  %v65_v5 = vmul.f32 %v36_v1, %v36_v1  ;;  %v66_v6 = vmul.f32 %v37_v2, %v37_v2  ;;  %v67_v7 = vmul.f32 %v38_v3, %v38_v3  ;;  %v47_v8 = vadd.f32 %v37_v2, %v36_v1  ;;  %v40_v9 = vld [vmem:[%s159_s0 + $0x20] sm:$0xff]  ;;  %v41_v12 = vld [vmem:[%s159_s0 + $0x28] sm:$0xff] }
   0x3   :  { %v68_v10 = vmul.f32 %v39_v4, %v39_v4  ;;  %v69_v14 = vmul.f32 %v40_v9, %v40_v9  ;;  %v42_v16 = vld [vmem:[%s159_s0 + $0x30] sm:$0xff]  ;;  %v70_v18 = vmul.f32 %v41_v12, %v41_v12  ;;  %v43_v20 = vld [vmem:[%s159_s0 + $0x38] sm:$0xff]  ;;  %v44_v24 = vld [vmem:[%s159_s0 + $0x40] sm:$0xff] }
   0x4   :  { %v75_v11 = vadd.f32 %v66_v6, %v65_v5  ;;  %v48_v13 = vadd.f32 %v47_v8, %v38_v3  ;;  %v71_v22 = vmul.f32 %v42_v16, %v42_v16  ;;  %v72_v26 = vmul.f32 %v43_v20, %v43_v20  ;;  %v45_v28 = vld [vmem:[%s159_s0 + $0x48] sm:$0xff] }
   0x5   :  { %v73_v30 = vmul.f32 %v44_v24, %v44_v24  ;;  %v74_v33 = vmul.f32 %v45_v28, %v45_v28 }
   0x6   :  { %v76_v15 = vadd.f32 %v75_v11, %v67_v7  ;;  %v49_v17 = vadd.f32 %v48_v13, %v39_v4 }
   0x8   :  { %v77_v19 = vadd.f32 %v76_v15, %v68_v10  ;;  %v50_v21 = vadd.f32 %v49_v17, %v40_v9  ;;  %v64_v50 = vld [vmem:[#allocation3] sm:$0x1] }
   0x9   :  { %v46_v49 = vld [vmem:[#allocation2] sm:$0x1] }
   0xa   :  { %v78_v23 = vadd.f32 %v77_v19, %v69_v14  ;;  %v51_v25 = vadd.f32 %v50_v21, %v41_v12 }
   0xc   :  { %v79_v27 = vadd.f32 %v78_v23, %v70_v18  ;;  %v52_v29 = vadd.f32 %v51_v25, %v42_v16 }
   0xe   :  { %v80_v31 = vadd.f32 %v79_v27, %v71_v22  ;;  %v53_v32 = vadd.f32 %v52_v29, %v43_v20 }
  0x10   :  { %v81_v34 = vadd.f32 %v80_v31, %v72_v26  ;;  %v54_v35 = vadd.f32 %v53_v32, %v44_v24 }
  0x12   :  { %v82_v36 = vadd.f32 %v81_v34, %v73_v30  ;;  %v55_v37 = vadd.f32 %v54_v35, %v45_v28 }
  0x14   :  { %v83_v38 = vadd.f32 %v82_v36, %v74_v33  ;;  %v56_v39 = vrot.slane %v55_v37, 4 }
  0x16   :  { %v84_v40 = vrot.slane %v83_v38, 4  ;;  %v57_v41 = vadd.f32 %v56_v39, %v55_v37 }
  0x18   :  { %v85_v42 = vadd.f32 %v84_v40, %v83_v38  ;;  %v58_v43 = vrot.slane %v57_v41, 2 }
  0x1a   :  { %v86_v44 = vrot.slane %v85_v42, 2  ;;  %v59_v45 = vadd.f32 %v58_v43, %v57_v41 }
  0x1c   :  { %v87_v46 = vadd.f32 %v86_v44, %v85_v42  ;;  %v60_v47 = vrot.slane %v59_v45, 1 }
  0x1e   :  { %v88_v48 = vrot.slane %v87_v46, 1  ;;  %v61_v51 = vadd.f32 %v60_v47, %v59_v45 }
  0x20   :  { %v89_v52 = vadd.f32 %v88_v48, %v87_v46  ;;  %v62_v53 = vadd.f32 %v61_v51, %v46_v49 }
  0x22   :  { %v90_v54 = vadd.f32 %v89_v52, %v64_v50  ;;  %63 = vst [vmem:[#allocation2] sm:$0x1] %v62_v53 }
  0x24   :  { %91 = vst [vmem:[#allocation3] sm:$0x1] %v90_v54 }
  0x29   :  { %v95_v55 = vld [vmem:[#allocation2] sm:$0x1] }
  0x2b   :  { %v114_v56 = vld [vmem:[#allocation3] ss:$0 sm:$0xff] }
  0x2c   :  { %v101_v57 = vsel %vm100_vm0, %v95_v55, %v114_v56 }
  0x2d   :  { %102 = vst [vmem:[%s160_s1] sm:$0x3] %v101_v57 }

</bundles_post_ra>
